<compile_context>
chip_gen: v6e
topology: v6e:2x2x1
jax: 0.10.0
libtpu: 0.0.40
codegen_flags: <defaults>
</compile_context>

<pallas_src>
import numpy as np
import jax
import jax.numpy as jnp
from jax import lax
from jax.experimental import pallas as pl
from jax.experimental.pallas import tpu as pltpu

# ---------------- model dims (small, consistent with the module) ----------------
B = 2           # batch
S = 8           # seq_len
H = 32          # config.hidden_size
I = 64          # config.intermediate_size (divisible by groups=8)
K = 4           # conv kernel size (conv1d_configs.kernel_sizes)
GROUPS = 8
RMS_EPS = 1e-6  # config.layer_norm_epsilon (MetaRMSNorm)
LN_EPS = 1e-6   # ln_2 eps
BS = B * S      # rows processed in one shot

# bf16 weight-slab row offsets (all multiples of the 16-row bf16 sublane tile)
W_IN_R0, W_IN_R1 = 0, 32          # fused in_proj weight (H, 2I) = (32, 128)
W_CV_R0, W_CV_R1 = 32, 288        # fused conv taps       (K*I, I) = (256, 64)
W_FC_R0, W_FC_R1 = 288, 352       # c_fc^T                (I, H)  = (64, 32)
W_OUT_R0, W_OUT_R1 = 352, 416     # out_proj^T            (I, H)  = (64, 32)
W_PO_R0, W_PO_R1 = 416, 448       # c_proj^T @ out_proj^T (H, H)  = (32, 32)
W_ROWS = 448


def _silu(x):
    return x * jax.nn.sigmoid(x)


def meta_block_kernel(x_ref, w_ref, b_ref, o_ref):
    # x_ref: (B*S, H) f32;  w_ref: (448, 128) bf16 weight slab;  b_ref: (8, 128) f32 bias/norm slab.
    x = x_ref[...].astype(jnp.float32)
    residual = x                                            # residual_in_fp32=True

    # --- carve parameter slabs (static slices; no extra DMAs) ---
    rms_w  = b_ref[0:1, 0:H]
    b_in   = b_ref[1:2, :]                                  # (1, 2I) fused in_proj bias
    conv_b = b_ref[2:3, 0:I]
    ln2_w  = b_ref[3:4, 0:I]
    ln2_b  = b_ref[4:5, 0:I]
    fc_b   = b_ref[5:6, 0:H]
    b_po   = b_ref[6:7, 0:H]                                # proj_b @ out_w_t + out_b

    w_in  = w_ref[W_IN_R0:W_IN_R1, :]                       # (H, 2I)
    w_cv  = w_ref[W_CV_R0:W_CV_R1, 0:I]                     # (K*I, I)
    w_fc  = w_ref[W_FC_R0:W_FC_R1, 0:H]                     # (I, H)
    w_out = w_ref[W_OUT_R0:W_OUT_R1, 0:H]                   # (I, H)
    w_po  = w_ref[W_PO_R0:W_PO_R1, 0:H]                     # (H, H)

    # --- MetaRMSNorm (f32) ---
    var = jnp.mean(x * x, axis=-1, keepdims=True)
    h = (x * lax.rsqrt(var + RMS_EPS)) * rms_w              # (BS, H)

    # --- in_proj: single fused matmul, lane-split into hidden / gate ---
    proj = jnp.dot(h.astype(jnp.bfloat16), w_in,
                   preferred_element_type=jnp.float32) + b_in          # (BS, 2I)
    hs = proj[:, :I]                                                    # (BS, I) f32
    gate = _silu(proj[:, I:])                                           # (BS, I) f32

    # --- causal grouped Conv1d fused into ONE matmul ---
    # y[t] = sum_d x[t-d] @ Tap_d  ==>  X_aug (BS, K*I) @ W_aug (K*I, I)
    # Shifted copies via XLU rolls + per-sequence causal mask (also blocks cross-batch leakage
    # now that batch is folded into rows).  Mask compares a (BS,1) position column (S power of 2).
    row = lax.broadcasted_iota(jnp.int32, (BS, 1), 0) & (S - 1)
    pieces = [hs.astype(jnp.bfloat16)]
    for d in range(1, K):
        rolled = pltpu.roll(hs, shift=d, axis=0)            # rolled[r] = hs[(r - d) mod BS]
        pieces.append(jnp.where(row >= d, rolled, 0.0).astype(jnp.bfloat16))
    x_aug = jnp.concatenate(pieces, axis=-1)                # (BS, K*I) bf16
    y = jnp.dot(x_aug, w_cv, preferred_element_type=jnp.float32) + conv_b

    # --- gate multiply ---
    resid2 = y * gate                                       # (BS, I) f32

    # --- independent tail matmul: resid2 @ out_w_t can overlap with LN/fc/silu ---
    tail = jnp.dot(resid2.astype(jnp.bfloat16), w_out,
                   preferred_element_type=jnp.float32)      # (BS, H)

    # --- ln_2: LayerNorm(I) (f32) ---
    mean = jnp.mean(resid2, axis=-1, keepdims=True)
    var2 = jnp.mean(jnp.square(resid2 - mean), axis=-1, keepdims=True)
    hn = (resid2 - mean) * lax.rsqrt(var2 + LN_EPS)
    hn = hn * ln2_w + ln2_b

    # --- MLP fc + silu, then composed (c_proj ∘ out_proj) matmul ---
    m = _silu(jnp.dot(hn.astype(jnp.bfloat16), w_fc,
                      preferred_element_type=jnp.float32) + fc_b)       # (BS, H)
    out = jnp.dot(m.astype(jnp.bfloat16), w_po,
                  preferred_element_type=jnp.float32) + tail + b_po     # (BS, H)

    # --- MetaBlock residual add ---
    o_ref[...] = (residual + out).astype(o_ref.dtype)


def meta_block(x, params):
    """x: (B, S, H) float32; params: {'wslab': bf16 (448,128), 'bslab': f32 (8,128)}."""
    x2d = x.reshape(BS, H)
    vmem = pl.BlockSpec(memory_space=pltpu.MemorySpace.VMEM)
    out2d = pl.pallas_call(
        meta_block_kernel,
        out_shape=jax.ShapeDtypeStruct((BS, H), jnp.float32),
        in_specs=[vmem, vmem, vmem],
        out_specs=vmem,
        input_output_aliases={0: 0},   # x is fully read before the single output store
    )(x2d, params["wslab"], params["bslab"])
    return out2d.reshape(B, S, H)


# ---------------- pure-JAX f32 reference (mirrors the PyTorch forward) ----------------
def reference(x, raw):
    xf = x.astype(jnp.float32)
    residual = xf
    var = jnp.mean(xf * xf, axis=-1, keepdims=True)
    h = raw["rms_w"] * (xf * lax.rsqrt(var + RMS_EPS))

    proj = h @ raw["w_in"].T + raw["b_in"]                  # (B, S, 2I)
    proj = jnp.transpose(proj, (0, 2, 1))                   # (B, 2I, S)
    hs, gate = proj[:, :I, :], proj[:, I:, :]
    gate = _silu(gate)

    # causal grouped conv1d (NCL)
    hs_pad = jnp.pad(hs, ((0, 0), (0, 0), (K - 1, 0)))
    conv = lax.conv_general_dilated(
        hs_pad, raw["conv_w"], window_strides=(1,), padding="VALID",
        dimension_numbers=("NCH", "OIH", "NCH"), feature_group_count=GROUPS)
    conv = conv[..., :S] + raw["conv_b"][None, :, None]

    hs = conv * gate
    hs = jnp.transpose(hs, (0, 2, 1))                       # (B, S, I)
    resid2 = hs
    mean = jnp.mean(hs, axis=-1, keepdims=True)
    var2 = jnp.mean((hs - mean) ** 2, axis=-1, keepdims=True)
    hn = (hs - mean) * lax.rsqrt(var2 + LN_EPS)
    hn = hn * raw["ln2_w"] + raw["ln2_b"]
    m = _silu(hn @ raw["fc_w"].T + raw["fc_b"])
    m = m @ raw["proj_w"].T + raw["proj_b"]
    hs = m + resid2
    out = hs @ raw["out_w"].T + raw["out_b"]
    return residual + out


def init_params(key):
    ks = jax.random.split(key, 16)
    scale = 0.05
    raw = {
        "rms_w":  jax.random.normal(ks[0], (H,), jnp.float32) * 0.1 + 1.0,
        "w_in":   jax.random.normal(ks[1], (2 * I, H), jnp.float32) * scale,
        "b_in":   jax.random.normal(ks[2], (2 * I,), jnp.float32) * scale,
        "conv_w": jax.random.normal(ks[3], (I, I // GROUPS, K), jnp.float32) * scale,
        "conv_b": jax.random.normal(ks[4], (I,), jnp.float32) * scale,
        "ln2_w":  jax.random.normal(ks[5], (I,), jnp.float32) * 0.1 + 1.0,
        "ln2_b":  jax.random.normal(ks[6], (I,), jnp.float32) * scale,
        "fc_w":   jax.random.normal(ks[7], (H, I), jnp.float32) * scale,   # c_fc: Linear(I, H)
        "fc_b":   jax.random.normal(ks[8], (H,), jnp.float32) * scale,
        "proj_w": jax.random.normal(ks[9], (I, H), jnp.float32) * scale,   # c_proj: Linear(H, I)
        "proj_b": jax.random.normal(ks[10], (I,), jnp.float32) * scale,
        "out_w":  jax.random.normal(ks[11], (H, I), jnp.float32) * scale,  # out_proj: Linear(I, H)
        "out_b":  jax.random.normal(ks[12], (H,), jnp.float32) * scale,
    }

    # -------- wrapper-side layout glue (numpy, f32; single bf16 cast at the end) --------
    w_in = np.asarray(raw["w_in"], np.float32)               # (2I, H)
    b_in = np.asarray(raw["b_in"], np.float32)               # (2I,)

    # grouped conv weight -> K block-diagonal taps, stacked into one (K*I, I) matrix
    # ordered by delay d=0..K-1 (row-block d holds Tap_d = weights at kernel index K-1-d).
    cw = np.asarray(raw["conv_w"], np.float32)               # (out=I, in/groups, K)
    per_group = I // GROUPS
    taps = np.zeros((K, I, I), np.float32)                   # taps[k, c_in, c_out]
    for c in range(I):
        g = c // per_group
        for ci_local in range(per_group):
            ci = g * per_group + ci_local
            taps[:, ci, c] = cw[c, ci_local, :]
    w_aug = np.concatenate([taps[K - 1 - d] for d in range(K)], axis=0)   # (K*I, I)

    fc_w_t   = np.asarray(raw["fc_w"], np.float32).T         # (I, H)
    proj_w_t = np.asarray(raw["proj_w"], np.float32).T       # (H, I)
    out_w_t  = np.asarray(raw["out_w"], np.float32).T        # (I, H)
    w_po = proj_w_t @ out_w_t                                 # (H, H), composed in f32
    b_po = np.asarray(raw["proj_b"], np.float32) @ out_w_t + np.asarray(raw["out_b"], np.float32)

    # bf16 weight slab, lane-padded to 128
    wslab = np.zeros((W_ROWS, 128), np.float32)
    wslab[W_IN_R0:W_IN_R1, :]      = w_in.T                  # (H, 2I) fused in_proj (transposed)
    wslab[W_CV_R0:W_CV_R1, 0:I]    = w_aug
    wslab[W_FC_R0:W_FC_R1, 0:H]    = fc_w_t
    wslab[W_OUT_R0:W_OUT_R1, 0:H]  = out_w_t
    wslab[W_PO_R0:W_PO_R1, 0:H]    = w_po

    # f32 bias / norm-parameter slab
    bslab = np.zeros((8, 128), np.float32)
    bslab[0, 0:H] = np.asarray(raw["rms_w"], np.float32)
    bslab[1, :]   = b_in                                      # [hs bias (I) | gate bias (I)]
    bslab[2, 0:I] = np.asarray(raw["conv_b"], np.float32)
    bslab[3, 0:I] = np.asarray(raw["ln2_w"], np.float32)
    bslab[4, 0:I] = np.asarray(raw["ln2_b"], np.float32)
    bslab[5, 0:H] = np.asarray(raw["fc_b"], np.float32)
    bslab[6, 0:H] = b_po

    params = {"wslab": jnp.asarray(wslab, jnp.bfloat16),
              "bslab": jnp.asarray(bslab, jnp.float32)}
    return raw, params


if __name__ == "__main__":
    key = jax.random.PRNGKey(0)
    k_x, k_p = jax.random.split(key)
    x = jax.random.normal(k_x, (B, S, H), jnp.float32)
    raw, params = init_params(k_p)

    # reference first (pure f32, mirrors the PyTorch forward)
    ref = jax.block_until_ready(reference(x, raw))

    out = meta_block(x, params)
    out = jax.block_until_ready(out)

    # bf16 MXU operands (f32 accumulation) + composed proj∘out weight -> relaxed tolerance.
    np.testing.assert_allclose(np.asarray(out), np.asarray(ref), rtol=2e-2, atol=2e-2)

    print("KERNEL_OK")
</pallas_src>

<mosaic_0001>
module attributes {stable_mosaic.version = 11 : i64} {
  func.func @meta_block_kernel(%arg0: memref<16x32xf32, #tpu.memory_space<vmem>>, %arg1: memref<448x128xbf16, #tpu.memory_space<vmem>>, %arg2: memref<8x128xf32, #tpu.memory_space<vmem>>, %arg3: memref<16x32xf32, #tpu.memory_space<vmem>>) attributes {dimension_semantics = [], scalar_prefetch = 0 : i64, scratch_operands = 0 : i64, tpu.core_type = #tpu.core_type<tc>} {
    %c0 = arith.constant 0 : index
    %c0_0 = arith.constant 0 : index
    %0 = vector.load %arg0[%c0, %c0_0] : memref<16x32xf32, #tpu.memory_space<vmem>>, vector<16x32xf32>
    %c0_1 = arith.constant 0 : index
    %c0_2 = arith.constant 0 : index
    %1 = vector.load %arg2[%c0_1, %c0_2] : memref<8x128xf32, #tpu.memory_space<vmem>>, vector<1x32xf32>
    %c1 = arith.constant 1 : index
    %c0_3 = arith.constant 0 : index
    %2 = vector.load %arg2[%c1, %c0_3] : memref<8x128xf32, #tpu.memory_space<vmem>>, vector<1x128xf32>
    %c2 = arith.constant 2 : index
    %c0_4 = arith.constant 0 : index
    %3 = vector.load %arg2[%c2, %c0_4] : memref<8x128xf32, #tpu.memory_space<vmem>>, vector<1x64xf32>
    %c3 = arith.constant 3 : index
    %c0_5 = arith.constant 0 : index
    %4 = vector.load %arg2[%c3, %c0_5] : memref<8x128xf32, #tpu.memory_space<vmem>>, vector<1x64xf32>
    %c4 = arith.constant 4 : index
    %c0_6 = arith.constant 0 : index
    %5 = vector.load %arg2[%c4, %c0_6] : memref<8x128xf32, #tpu.memory_space<vmem>>, vector<1x64xf32>
    %c5 = arith.constant 5 : index
    %c0_7 = arith.constant 0 : index
    %6 = vector.load %arg2[%c5, %c0_7] : memref<8x128xf32, #tpu.memory_space<vmem>>, vector<1x32xf32>
    %c6 = arith.constant 6 : index
    %c0_8 = arith.constant 0 : index
    %7 = vector.load %arg2[%c6, %c0_8] : memref<8x128xf32, #tpu.memory_space<vmem>>, vector<1x32xf32>
    %c0_9 = arith.constant 0 : index
    %c0_10 = arith.constant 0 : index
    %8 = vector.load %arg1[%c0_9, %c0_10] : memref<448x128xbf16, #tpu.memory_space<vmem>>, vector<32x128xbf16>
    %c32 = arith.constant 32 : index
    %c0_11 = arith.constant 0 : index
    %9 = vector.load %arg1[%c32, %c0_11] : memref<448x128xbf16, #tpu.memory_space<vmem>>, vector<256x64xbf16>
    %c288 = arith.constant 288 : index
    %c0_12 = arith.constant 0 : index
    %10 = vector.load %arg1[%c288, %c0_12] : memref<448x128xbf16, #tpu.memory_space<vmem>>, vector<64x32xbf16>
    %c352 = arith.constant 352 : index
    %c0_13 = arith.constant 0 : index
    %11 = vector.load %arg1[%c352, %c0_13] : memref<448x128xbf16, #tpu.memory_space<vmem>>, vector<64x32xbf16>
    %c416 = arith.constant 416 : index
    %c0_14 = arith.constant 0 : index
    %12 = vector.load %arg1[%c416, %c0_14] : memref<448x128xbf16, #tpu.memory_space<vmem>>, vector<32x32xbf16>
    %13 = arith.mulf %0, %0 : vector<16x32xf32>
    %cst = arith.constant dense<0.000000e+00> : vector<16xf32>
    %14 = vector.multi_reduction <add>, %13, %cst [1] : vector<16x32xf32> to vector<16xf32>
    %15 = vector.shape_cast %14 : vector<16xf32> to vector<16x1xf32>
    %cst_15 = arith.constant 3.200000e+01 : f32
    %16 = vector.broadcast %cst_15 : f32 to vector<16x1xf32>
    %17 = arith.divf %15, %16 : vector<16x1xf32>
    %cst_16 = arith.constant 9.99999997E-7 : f32
    %18 = vector.broadcast %cst_16 : f32 to vector<16x1xf32>
    %19 = arith.addf %17, %18 : vector<16x1xf32>
    %20 = math.rsqrt %19 : vector<16x1xf32>
    %21 = vector.broadcast %20 : vector<16x1xf32> to vector<16x32xf32>
    %22 = arith.mulf %0, %21 : vector<16x32xf32>
    %23 = vector.broadcast %1 : vector<1x32xf32> to vector<16x32xf32>
    %24 = arith.mulf %22, %23 : vector<16x32xf32>
    %25 = arith.truncf %24 : vector<16x32xf32> to vector<16x32xbf16>
    %cst_17 = arith.constant dense<0.000000e+00> : vector<16x128xf32>
    %26 = tpu.matmul %25, %8, %cst_17 {dimension_numbers = #tpu.dot_dimension_numbers<[1], [0], [0], [1], [0, 0, 1, 1], [], []>} : vector<16x32xbf16>, vector<32x128xbf16>, vector<16x128xf32> -> vector<16x128xf32>
    %27 = vector.broadcast %2 : vector<1x128xf32> to vector<16x128xf32>
    %28 = arith.addf %26, %27 : vector<16x128xf32>
    %29 = vector.extract_strided_slice %28 {offsets = [0, 0], sizes = [16, 64], strides = [1, 1]} : vector<16x128xf32> to vector<16x64xf32>
    %30 = vector.extract_strided_slice %28 {offsets = [0, 64], sizes = [16, 64], strides = [1, 1]} : vector<16x128xf32> to vector<16x64xf32>
    %31 = arith.negf %30 : vector<16x64xf32>
    %32 = math.exp %31 : vector<16x64xf32>
    %cst_18 = arith.constant 1.000000e+00 : f32
    %33 = vector.broadcast %cst_18 : f32 to vector<16x64xf32>
    %34 = arith.addf %33, %32 : vector<16x64xf32>
    %35 = arith.divf %33, %34 : vector<16x64xf32>
    %36 = arith.mulf %30, %35 : vector<16x64xf32>
    %37 = tpu.iota {dimensions = array<i32: 0>} : vector<16x1xi32>
    %c7_i32 = arith.constant 7 : i32
    %38 = vector.broadcast %c7_i32 : i32 to vector<16x1xi32>
    %39 = arith.andi %37, %38 : vector<16x1xi32>
    %40 = arith.truncf %29 : vector<16x64xf32> to vector<16x64xbf16>
    %c1_i32 = arith.constant 1 : i32
    %41 = tpu.dynamic_rotate %29 by %c1_i32 dim 0 : vector<16x64xf32>, i32 -> vector<16x64xf32>
    %c1_i32_19 = arith.constant 1 : i32
    %42 = vector.broadcast %c1_i32_19 : i32 to vector<16x1xi32>
    %43 = arith.cmpi sge, %39, %42 : vector<16x1xi32>
    %cst_20 = arith.constant 0.000000e+00 : f32
    %44 = vector.shape_cast %43 : vector<16x1xi1> to vector<16x1xi1>
    %45 = vector.broadcast %44 : vector<16x1xi1> to vector<16x64xi1>
    %46 = vector.broadcast %cst_20 : f32 to vector<16x64xf32>
    %47 = arith.select %45, %41, %46 : vector<16x64xi1>, vector<16x64xf32>
    %48 = arith.truncf %47 : vector<16x64xf32> to vector<16x64xbf16>
    %c2_i32 = arith.constant 2 : i32
    %49 = tpu.dynamic_rotate %29 by %c2_i32 dim 0 : vector<16x64xf32>, i32 -> vector<16x64xf32>
    %c2_i32_21 = arith.constant 2 : i32
    %50 = vector.broadcast %c2_i32_21 : i32 to vector<16x1xi32>
    %51 = arith.cmpi sge, %39, %50 : vector<16x1xi32>
    %cst_22 = arith.constant 0.000000e+00 : f32
    %52 = vector.shape_cast %51 : vector<16x1xi1> to vector<16x1xi1>
    %53 = vector.broadcast %52 : vector<16x1xi1> to vector<16x64xi1>
    %54 = vector.broadcast %cst_22 : f32 to vector<16x64xf32>
    %55 = arith.select %53, %49, %54 : vector<16x64xi1>, vector<16x64xf32>
    %56 = arith.truncf %55 : vector<16x64xf32> to vector<16x64xbf16>
    %c3_i32 = arith.constant 3 : i32
    %57 = tpu.dynamic_rotate %29 by %c3_i32 dim 0 : vector<16x64xf32>, i32 -> vector<16x64xf32>
    %c3_i32_23 = arith.constant 3 : i32
    %58 = vector.broadcast %c3_i32_23 : i32 to vector<16x1xi32>
    %59 = arith.cmpi sge, %39, %58 : vector<16x1xi32>
    %cst_24 = arith.constant 0.000000e+00 : f32
    %60 = vector.shape_cast %59 : vector<16x1xi1> to vector<16x1xi1>
    %61 = vector.broadcast %60 : vector<16x1xi1> to vector<16x64xi1>
    %62 = vector.broadcast %cst_24 : f32 to vector<16x64xf32>
    %63 = arith.select %61, %57, %62 : vector<16x64xi1>, vector<16x64xf32>
    %64 = arith.truncf %63 : vector<16x64xf32> to vector<16x64xbf16>
    %65 = tpu.concatenate %40, %48, %56, %64 in 1 : vector<16x64xbf16>, vector<16x64xbf16>, vector<16x64xbf16>, vector<16x64xbf16> -> vector<16x256xbf16>
    %cst_25 = arith.constant dense<0.000000e+00> : vector<16x64xf32>
    %66 = tpu.matmul %65, %9, %cst_25 {dimension_numbers = #tpu.dot_dimension_numbers<[1], [0], [0], [1], [0, 0, 1, 1], [], []>} : vector<16x256xbf16>, vector<256x64xbf16>, vector<16x64xf32> -> vector<16x64xf32>
    %67 = vector.broadcast %3 : vector<1x64xf32> to vector<16x64xf32>
    %68 = arith.addf %66, %67 : vector<16x64xf32>
    %69 = arith.mulf %68, %36 : vector<16x64xf32>
    %70 = arith.truncf %69 : vector<16x64xf32> to vector<16x64xbf16>
    %cst_26 = arith.constant dense<0.000000e+00> : vector<16x32xf32>
    %71 = tpu.matmul %70, %11, %cst_26 {dimension_numbers = #tpu.dot_dimension_numbers<[1], [0], [0], [1], [0, 0, 1, 1], [], []>} : vector<16x64xbf16>, vector<64x32xbf16>, vector<16x32xf32> -> vector<16x32xf32>
    %cst_27 = arith.constant dense<0.000000e+00> : vector<16xf32>
    %72 = vector.multi_reduction <add>, %69, %cst_27 [1] : vector<16x64xf32> to vector<16xf32>
    %73 = vector.shape_cast %72 : vector<16xf32> to vector<16x1xf32>
    %cst_28 = arith.constant 6.400000e+01 : f32
    %74 = vector.broadcast %cst_28 : f32 to vector<16x1xf32>
    %75 = arith.divf %73, %74 : vector<16x1xf32>
    %76 = vector.broadcast %75 : vector<16x1xf32> to vector<16x64xf32>
    %77 = arith.subf %69, %76 : vector<16x64xf32>
    %78 = arith.mulf %77, %77 : vector<16x64xf32>
    %cst_29 = arith.constant dense<0.000000e+00> : vector<16xf32>
    %79 = vector.multi_reduction <add>, %78, %cst_29 [1] : vector<16x64xf32> to vector<16xf32>
    %80 = vector.shape_cast %79 : vector<16xf32> to vector<16x1xf32>
    %cst_30 = arith.constant 6.400000e+01 : f32
    %81 = vector.broadcast %cst_30 : f32 to vector<16x1xf32>
    %82 = arith.divf %80, %81 : vector<16x1xf32>
    %83 = vector.broadcast %75 : vector<16x1xf32> to vector<16x64xf32>
    %84 = arith.subf %69, %83 : vector<16x64xf32>
    %cst_31 = arith.constant 9.99999997E-7 : f32
    %85 = vector.broadcast %cst_31 : f32 to vector<16x1xf32>
    %86 = arith.addf %82, %85 : vector<16x1xf32>
    %87 = math.rsqrt %86 : vector<16x1xf32>
    %88 = vector.broadcast %87 : vector<16x1xf32> to vector<16x64xf32>
    %89 = arith.mulf %84, %88 : vector<16x64xf32>
    %90 = vector.broadcast %4 : vector<1x64xf32> to vector<16x64xf32>
    %91 = arith.mulf %89, %90 : vector<16x64xf32>
    %92 = vector.broadcast %5 : vector<1x64xf32> to vector<16x64xf32>
    %93 = arith.addf %91, %92 : vector<16x64xf32>
    %94 = arith.truncf %93 : vector<16x64xf32> to vector<16x64xbf16>
    %cst_32 = arith.constant dense<0.000000e+00> : vector<16x32xf32>
    %95 = tpu.matmul %94, %10, %cst_32 {dimension_numbers = #tpu.dot_dimension_numbers<[1], [0], [0], [1], [0, 0, 1, 1], [], []>} : vector<16x64xbf16>, vector<64x32xbf16>, vector<16x32xf32> -> vector<16x32xf32>
    %96 = vector.broadcast %6 : vector<1x32xf32> to vector<16x32xf32>
    %97 = arith.addf %95, %96 : vector<16x32xf32>
    %98 = arith.negf %97 : vector<16x32xf32>
    %99 = math.exp %98 : vector<16x32xf32>
    %cst_33 = arith.constant 1.000000e+00 : f32
    %100 = vector.broadcast %cst_33 : f32 to vector<16x32xf32>
    %101 = arith.addf %100, %99 : vector<16x32xf32>
    %102 = arith.divf %100, %101 : vector<16x32xf32>
    %103 = arith.mulf %97, %102 : vector<16x32xf32>
    %104 = arith.truncf %103 : vector<16x32xf32> to vector<16x32xbf16>
    %cst_34 = arith.constant dense<0.000000e+00> : vector<16x32xf32>
    %105 = tpu.matmul %104, %12, %cst_34 {dimension_numbers = #tpu.dot_dimension_numbers<[1], [0], [0], [1], [0, 0, 1, 1], [], []>} : vector<16x32xbf16>, vector<32x32xbf16>, vector<16x32xf32> -> vector<16x32xf32>
    %106 = arith.addf %105, %71 : vector<16x32xf32>
    %107 = vector.broadcast %7 : vector<1x32xf32> to vector<16x32xf32>
    %108 = arith.addf %106, %107 : vector<16x32xf32>
    %109 = arith.addf %0, %108 : vector<16x32xf32>
    %c0_35 = arith.constant 0 : index
    %c0_36 = arith.constant 0 : index
    %110 = vector.load %arg3[%c0_35, %c0_36] : memref<16x32xf32, #tpu.memory_space<vmem>>, vector<16x32xf32>
    tpu.vector_store %arg3[%c0_35, %c0_36], %109 {strides = array<i32>} : memref<16x32xf32, #tpu.memory_space<vmem>>, vector<16x32xf32>,
    return
  }
}

</mosaic_0001>

<bundles_post_ra>
// kernel: tpu_custom_call.1
= control target key start
LH: loop header
LB: loop body
LE: loop exit
PB: predicated region body
PF: predicated region fallthrough
CT: control target
= control target key end

     0   :  { %8 = vsyncpa [#allocation3], 0  ;;  %s1085_s0 = inlined_call_operand.hbm [shape: f32[16,32], index: 0, kind: input, shape index: {}, may-alias: {0,3}]   ;;  %s1086_s1 = inlined_call_operand.hbm [shape: bf16[448,128], index: 1, kind: input, shape index: {}]   ;;  %s1087_s2 = inlined_call_operand.vmem [shape: f32[8,128], index: 2, kind: input, shape index: {}]   ;;  %s1088_s3 = inlined_call_operand.hbm [shape: f32[16,32], index: 3, kind: output, shape index: {}, may-alias: {0,3}]  }
   0x1   :  { %9 = vsyncpa [#allocation6], 0 }
   0x2   :  { %10 = vsyncpa [#allocation4], 0  ;;  %s950_s12 = smov [#allocation2]  }
   0x3   :  { %s16_s13 = sshll.u32 %s950_s12, 4  ;;  %s17_s13 = int_to_ptr.vmem [resolvable:$true] %s16_s13 }
   0x4   :  { %s892_s14 = scalar_lea.vmem %s17_s13, 256  ;;  %p897_p1 = scmp.lt.s32.totalorder %s17_s13, %s17_s13 }
   0x5   :  { %p893_p0 = scmp.ne.s32.totalorder %s17_s13, %s892_s14  ;;  %p898_p2 = scmp.lt.s32.totalorder %s892_s14, %s892_s14 }
   0x7   :  { %p899_p3 = por %p898_p2, %p897_p1 }
   0x9   :  { %p900_p4 = pnand %p899_p3, %p893_p0 }
   0xb   :  { %903 = shalt.err (!%p900_p4)
}
   0xc   :  { %s951_s15 = smov 128   ;;  %s952_s16 = smov 8  }
   0xd   :  { %22 = dma.hbm_to_vmem [thread:$0]  %s1085_s0, 256, %s17_s13, [#allocation3], %s951_s15, %s951_s15, %s952_s16  }
   0xe   :  { %s953_s19 = smov [#allocation5]  }
   0xf   :  { %s28_s20 = sshll.u32 %s953_s19, 4  ;;  %s29_s20 = int_to_ptr.vmem [resolvable:$true] %s28_s20 }
  0x10   :  { %s912_s21 = scalar_lea.vmem %s29_s20, 3584  ;;  %p917_p6 = scmp.lt.s32.totalorder %s29_s20, %s29_s20 }
  0x11   :  { %p913_p5 = scmp.ne.s32.totalorder %s29_s20, %s912_s21  ;;  %p918_p7 = scmp.lt.s32.totalorder %s912_s21, %s912_s21 }
  0x13   :  { %p919_p8 = por %p918_p7, %p917_p6 }
  0x15   :  { %p920_p9 = pnand %p919_p8, %p913_p5 }
  0x17   :  { %923 = shalt.err (!%p920_p9)
}
  0x18   :  { %s954_s22 = smov 64   ;;  %s955_s23 = smov 4  }
  0x19   :  { %34 = dma.hbm_to_vmem [thread:$0]  %s1086_s1, 3584, %s29_s20, [#allocation6], %s954_s22, %s954_s22, %s955_s23  }
  0x1a   :  { %944 = dma.done.wait [#allocation3], 256  }
  0x1b   :  { %945 = vsyncadd [#allocation3], 4294967040 }
  0x1c   :  { %946 = dma.done.wait [#allocation6], 3584  }
  0x1d   :  { %947 = vsyncadd [#allocation6], 4294963712  ;;  %v990_v0 = vld [vmem:[#allocation2] sm:$0xff]  ;;  %vm111_vm0 = vcmask 261120   ;;  %v992_v1 = vld [vmem:[#allocation2 + $0x8] sm:$0xff]  ;;  %v956_v7 = vmov 0.0   ;;  %v208_v37 = vlaneseq }
  0x1e   :  { %v109_v2 = vmul.f32 %v990_v0, %v990_v0  ;;  %v110_v3 = vmul.f32 %v992_v1, %v992_v1  ;;  %v832_v6 = vld [vmem:[#allocation5 + $0x8] sm:$0xff]   ;;  %783 = vmatprep.subr.bf16.mxu0 %v956_v7  ;;  %vm957_vm1 = vmmov 0   ;;  %v833_v8 = vld [vmem:[#allocation5] sm:$0xff]   ;;  %v702_v18 = vld [vmem:[%s1087_s2] ss:$0 sm:$0xff]  ;;  %vm262_vm11 = vcmask 523264  }
  0x1f   :  { %787 = vmatprep.mubr.msk.bf16.mxu0 %vm957_vm1, %v956_v7  ;;  %784 = vmatpush3.bf16.msra.mxu0 %v832_v6  ;;  %v834_v23 = vld [vmem:[#allocation5 + $0x88] sm:$0xff]   ;;  %v836_v25 = vld [vmem:[#allocation5 + $0x80] sm:$0xff]   ;;  %v838_v27 = vld [vmem:[#allocation5 + $0x78] sm:$0xff]   ;;  %v209_v38 = vshrl.u32 %v208_v37, 7  ;;  %s958_s11 = smov [#allocation7]  }
  0x20   :  { %v112_v4 = vsel %vm111_vm0, %v109_v2, 0.0  ;;  %v115_v5 = vsel %vm111_vm0, %v110_v3, 0.0  ;;  %785 = vmatprep.subr.bf16.mxu0 %v956_v7  ;;  %v835_v24 = vld [vmem:[#allocation5 + $0x48] sm:$0xff]   ;;  %748 = vmatprep.subr.bf16.mxu1 %v834_v23  ;;  %v837_v26 = vld [vmem:[#allocation5 + $0x40] sm:$0xff]   ;;  %v839_v28 = vld [vmem:[#allocation5 + $0x38] sm:$0xff]   ;;  %s689_s12 = sshll.u32 %s958_s11, 4  ;;  %s690_s12 = int_to_ptr.vmem [resolvable:$true] %s689_s12 }
  0x21   :  { %113 = vadd.xlane.f32.xlu0 %v112_v4  ;;  %749 = vmatpush3.bf16.msra.mxu1 %v835_v24  ;;  %v840_v29 = vld [vmem:[#allocation5 + $0x70] sm:$0xff]   ;;  %v842_v31 = vld [vmem:[#allocation5 + $0x68] sm:$0xff]   ;;  %v844_v33 = vld [vmem:[#allocation5 + $0x60] sm:$0xff]   ;;  %v210_v39 = vadd.s32 8, %v209_v38  ;;  %v211_v43 = vand.u32 7, %v209_v38  ;;  %vm244_vm2 = vcmp.lt.s32.totalorder %v209_v38, 3  ;;  %p929_p11 = scmp.lt.s32.totalorder %s690_s12, %s690_s12 }
  0x22   :  { %750 = vmatprep.subr.bf16.mxu1 %v836_v25  ;;  %v841_v30 = vld [vmem:[#allocation5 + $0x30] sm:$0xff]   ;;  %v843_v32 = vld [vmem:[#allocation5 + $0x28] sm:$0xff]   ;;  %v845_v34 = vld [vmem:[#allocation5 + $0x20] sm:$0xff]   ;;  %vm216_vm4 = vcmp.lt.s32.totalorder %v209_v38, 1  ;;  %vm230_vm6 = vcmp.lt.s32.totalorder %v209_v38, 2 }
  0x23   :  { %786 = vmatpush3.bf16.msra.mxu0 %v833_v8  ;;  %v846_v35 = vld [vmem:[#allocation5 + $0x58] sm:$0xff]   ;;  %v703_v40 = vld [vmem:[%s1087_s2 + $0x1] ss:$0 sm:$0xff]  ;;  %v212_v45 = vand.u32 7, %v210_v39  ;;  %vm247_vm3 = vcmp.ge.s32.totalorder %v211_v43, 3  ;;  %vm219_vm7 = vcmp.ge.s32.totalorder %v211_v43, 1 }
  0x24   :  { %791 = vmatprep.subr.bf16.mxu0 %v956_v7  ;;  %v847_v36 = vld [vmem:[#allocation5 + $0x18] sm:$0xff]   ;;  %v848_v41 = vld [vmem:[#allocation5 + $0x50] sm:$0xff]   ;;  %vm233_vm9 = vcmp.ge.s32.totalorder %v211_v43, 2 }
  0x25   :  { %116 = vadd.xlane.f32.xlu0 %v115_v5  ;;  %751 = vmatpush3.bf16.msra.mxu1 %v837_v26  ;;  %v849_v46 = vld [vmem:[#allocation5 + $0x10] sm:$0xff]   ;;  %vm248_vm5 = vcmp.ge.s32.totalorder %v212_v45, 3  ;;  %vm220_vm8 = vcmp.ge.s32.totalorder %v212_v45, 1  ;;  %vm234_vm10 = vcmp.ge.s32.totalorder %v212_v45, 2  ;;  %v850_v26 = vld [vmem:[#allocation5 + $0xc8] sm:$0xff]  }
  0x26   :  { %752 = vmatprep.subr.bf16.mxu1 %v838_v27  ;;  %v851_v27 = vld [vmem:[#allocation5 + $0xc0] sm:$0xff]  }
  0x29   :  { %753 = vmatpush3.bf16.msra.mxu1 %v839_v28  ;;  %v852_v28 = vld [vmem:[#allocation5 + $0xb8] sm:$0xff]  }
  0x2a   :  { %754 = vmatprep.subr.bf16.mxu1 %v840_v29  ;;  %v853_v29 = vld [vmem:[#allocation5 + $0xb0] sm:$0xff]  }
  0x2d   :  { %755 = vmatpush3.bf16.msra.mxu1 %v841_v30 }
  0x2e   :  { %756 = vmatprep.subr.bf16.mxu1 %v842_v31  ;;  %v709_v31 = vld [vmem:[%s1087_s2 + $0x2] ss:$0 sm:$0xff] }
  0x31   :  { %757 = vmatpush3.bf16.msra.mxu1 %v843_v32 }
  0x32   :  { %758 = vmatprep.subr.bf16.mxu1 %v844_v33 }
  0x35   :  { %759 = vmatpush3.bf16.msra.mxu1 %v845_v34 }
  0x36   :  { %760 = vmatprep.subr.bf16.mxu1 %v846_v35 }
  0x39   :  { %761 = vmatpush3.bf16.msra.mxu1 %v847_v36 }
  0x3a   :  { %762 = vmatprep.subr.bf16.mxu1 %v848_v41 }
  0x3d   :  { %763 = vmatpush3.bf16.msra.mxu1 %v849_v46 }
  0x3e   :  { %815 = vmatprep.subr.bf16.mxu1 %v956_v7 }
  0xaa   :  { %v114_v9 = vpop.xlane.xlu0 %113 }
  0xab   :  { %v119_v10 = vmul.f32 0.03125, %v114_v9 }
  0xad   :  { %v121_v11 = vadd.f32 1e-06, %v119_v10 }
  0xae   :  { %v117_v12 = vpop.xlane.xlu0 %116 }
  0xaf   :  { %860 = vrsqrt.f32 %v121_v11  ;;  %v120_v13 = vmul.f32 0.03125, %v117_v12 }
  0xb1   :  { %v122_v14 = vadd.f32 1e-06, %v120_v13 }
  0xb3   :  { %862 = vrsqrt.f32 %v122_v14 }
  0xbc   :  { %v861_v15 = vpop.eup %860 }
  0xbd   :  { %v125_v16 = vmul.f32 %v861_v15, %v990_v0 }
  0xbf   :  { %v131_v20 = vmul.f32 %v702_v18, %v125_v16 }
  0xc0   :  { %v863_v17 = vpop.eup %862 }
  0xc1   :  { %v126_v19 = vmul.f32 %v863_v17, %v992_v1 }
  0xc3   :  { %v132_v21 = vmul.f32 %v702_v18, %v126_v19 }
  0xc5   :  { %v133_v22 = vpack.c.bf16 %v132_v21, %v131_v20 }
  0xc7   :  { %788 = vmatmul.mubr.msk.bf16.vlgmr.msra.gmra.mxu0 %vm111_vm0, %v133_v22 }
  0xc8   :  { %799 = vmatprep.mubr.msk.bf16.mxu0 %vm957_vm1, %v956_v7  ;;  %792 = vmatpush3.bf16.msra.mxu0 %v850_v26 }
  0xc9   :  { %793 = vmatprep.subr.bf16.mxu0 %v956_v7 }
  0xcc   :  { %794 = vmatpush3.bf16.msra.mxu0 %v851_v27 }
  0xcd   :  { %795 = vmatprep.subr.bf16.mxu0 %v956_v7 }
  0xd0   :  { %796 = vmatpush3.bf16.msra.mxu0 %v852_v28 }
  0xd1   :  { %797 = vmatprep.subr.bf16.mxu0 %v956_v7 }
  0xd4   :  { %798 = vmatpush3.bf16.msra.mxu0 %v853_v29 }
  0xd5   :  { %803 = vmatprep.subr.bf16.mxu0 %v956_v7 }
 0x187   :  { %v187_v42 = vpop.f32.mrf.mxu0 }
 0x188   :  { %v1016_v44 = vadd.f32 %v703_v40, %v187_v42 }
 0x189   :  { %v789_v47 = vpop.f32.mrf.mxu0 }
 0x18a   :  { %v707_v48 = vmul.f32 -1.442695, %v1016_v44  ;;  %v242_v52 = vrot.slane %v1016_v44, 5  ;;  %v214_v53 = vrot.slane %v1016_v44, 7  ;;  %v228_v58 = vrot.slane %v1016_v44, 6 }
 0x18b   :  { %v190_v49 = vpop.f32.mrf.mxu0 }
 0x18c   :  { %864 = vpow2.f32 %v707_v48  ;;  %v191_v50 = vadd.f32 %v703_v40, %v190_v49 }
 0x18d   :  { %v790_v51 = vpop.f32.mrf.mxu0 }
 0x18e   :  { %v708_v54 = vmul.f32 -1.442695, %v191_v50  ;;  %v243_v55 = vrot.slane %v191_v50, 5  ;;  %v215_v56 = vrot.slane %v191_v50, 7  ;;  %v229_v57 = vrot.slane %v191_v50, 6 }
 0x18f   :  { %v213_v59 = vpack.c.bf16 %v191_v50, %v1016_v44 }
 0x190   :  { %866 = vpow2.f32 %v708_v54  ;;  %v245_v60 = vsel %vm244_vm2, %v242_v52, %v243_v55  ;;  %v246_v61 = vsel %vm244_vm2, %v243_v55, %v242_v52  ;;  %v217_v62 = vsel %vm216_vm4, %v214_v53, %v215_v56 }
 0x191   :  { %v253_v63 = vsel %vm247_vm3, %v246_v61, 0.0  ;;  %v254_v2 = vsel %vm248_vm5, %v245_v60, 0.0  ;;  %v218_v3 = vsel %vm216_vm4, %v215_v56, %v214_v53  ;;  %v231_v5 = vsel %vm230_vm6, %v228_v58, %v229_v57  ;;  %v854_v56 = vld [vmem:[#allocation5 + $0xa8] sm:$0xff]  }
 0x192   :  { %v255_v4 = vpack.c.bf16 %v254_v2, %v253_v63  ;;  %v232_v6 = vsel %vm230_vm6, %v229_v57, %v228_v58  ;;  %v225_v8 = vsel %vm219_vm7, %v218_v3, 0.0  ;;  %v226_v9 = vsel %vm220_vm8, %v217_v62, 0.0  ;;  %v855_v57 = vld [vmem:[#allocation5 + $0xa0] sm:$0xff]   ;;  %v856_v58 = vld [vmem:[#allocation5 + $0x98] sm:$0xff]  }
 0x193   :  { %v239_v10 = vsel %vm233_vm9, %v232_v6, 0.0  ;;  %v240_v11 = vsel %vm234_vm10, %v231_v5, 0.0  ;;  %v227_v13 = vpack.c.bf16 %v226_v9, %v225_v8 }
 0x194   :  { %260 = vrot.lane.b32.xlu1 %v255_v4, %s954_s22  ;;  %v241_v12 = vpack.c.bf16 %v240_v11, %v239_v10  ;;  %v731_v11 = vld [vmem:[%s1087_s2 + $0x3] ss:$0 sm:$0xff] }
 0x198   :  { %257 = vrot.lane.b32.xlu1 %v227_v13, %s954_s22 }
 0x199   :  { %v865_v14 = vpop.eup %864 }
 0x19a   :  { %v200_v15 = vadd.f32 1.0, %v865_v14 }
 0x19c   :  { %868 = vrcp.f32 %v200_v15  ;;  %v732_v15 = vld [vmem:[%s1087_s2 + $0x4] ss:$0 sm:$0xff] }
 0x19d   :  { %v867_v16 = vpop.eup %866 }
 0x19e   :  { %v201_v17 = vadd.f32 1.0, %v867_v16 }
 0x1a0   :  { %870 = vrcp.f32 %v201_v17 }
 0x1a9   :  { %v869_v18 = vpop.eup %868 }
 0x1aa   :  { %v206_v19 = vmul.f32 %v869_v18, %v1016_v44 }
 0x1ac   :  { %414 = vrot.lane.b32.xlu0 %v206_v19, %s954_s22 }
 0x1ad   :  { %v871_v20 = vpop.eup %870 }
 0x1ae   :  { %v207_v21 = vmul.f32 %v871_v20, %v191_v50  ;;  %v858_v20 = vld [vmem:[#allocation5 + $0xd8] sm:$0xff]  }
 0x1b0   :  { %416 = vrot.lane.b32.xlu1 %v207_v21, %s954_s22  ;;  %v859_v21 = vld [vmem:[#allocation5 + $0xd0] sm:$0xff]  }
 0x206   :  { %v261_v22 = vpop.permute.xlu1 %260 }
 0x207   :  { %v269_v23 = vsel %vm262_vm11, %v241_v12, %v261_v22  ;;  %v733_v22 = vld [vmem:[%s1087_s2 + $0x5] ss:$0 sm:$0xff] }
 0x208   :  { %403 = vmatprep.mubr.bf16.mxu1 %v269_v23 }
 0x20a   :  { %v258_v24 = vpop.permute.xlu1 %257 }
 0x20b   :  { %v265_v25 = vsel %vm262_vm11, %v213_v59, %v258_v24  ;;  %v857_v59 = vld [vmem:[#allocation5 + $0x90] sm:$0xff]  }
 0x20c   :  { %404 = vmatmul.mubr.bf16.vlgmr.msra.gmra.mxu1 %v265_v25 }
 0x20d   :  { %819 = vmatprep.mubr.msk.bf16.mxu1 %vm957_vm1, %v956_v7  ;;  %816 = vmatpush3.bf16.msra.mxu1 %v858_v20 }
 0x20e   :  { %817 = vmatprep.subr.bf16.mxu1 %v956_v7 }
 0x211   :  { %818 = vmatpush3.bf16.msra.mxu1 %v859_v21 }
 0x21e   :  { %v415_v36 = vpop.permute.xlu0 %414 }
 0x222   :  { %v417_v42 = vpop.permute.xlu1 %416 }
 0x2cc   :  { %v764_v30 = vpop.f32.mrf.mxu1 }
 0x2ce   :  { %v765_v32 = vpop.f32.mrf.mxu1 }
 0x2cf   :  { %v766_v33 = vadd.f32 %v765_v32, %v764_v30 }
 0x2d0   :  { %v767_v34 = vpop.f32.mrf.mxu1 }
 0x2d1   :  { %v406_v35 = vadd.f32 %v766_v33, %v709_v31 }
 0x2d2   :  { %v768_v37 = vpop.f32.mrf.mxu1 }
 0x2d3   :  { %v420_v38 = vmul.f32 %v415_v36, %v406_v35  ;;  %v769_v39 = vadd.f32 %v768_v37, %v767_v34 }
 0x2d5   :  { %v409_v40 = vadd.f32 %v769_v39, %v709_v31  ;;  %v491_v41 = vsel %vm262_vm11, %v420_v38, 0.0  ;;  %v744_v39 = vld [vmem:[%s1087_s2 + $0x6] ss:$0 sm:$0xff]  ;;  %s924_s2 = scalar_lea.vmem %s690_s12, 256 }
 0x2d6   :  { %492 = vadd.xlane.f32.xlu1 %v491_v41  ;;  %p925_p10 = scmp.ne.s32.totalorder %s690_s12, %s924_s2  ;;  %p930_p12 = scmp.lt.s32.totalorder %s924_s2, %s924_s2 }
 0x2d7   :  { %v421_v43 = vmul.f32 %v417_v42, %v409_v40 }
 0x2d8   :  { %p931_p13 = por %p930_p12, %p929_p11 }
 0x2d9   :  { %v422_v44 = vpack.c.bf16 %v421_v43, %v420_v38  ;;  %v494_v45 = vsel %vm262_vm11, %v421_v43, 0.0 }
 0x2da   :  { %495 = vadd.xlane.f32.xlu0 %v494_v45  ;;  %p932_p0 = pnand %p931_p13, %p925_p10 }
 0x2db   :  { %800 = vmatmul.mubr.msk.bf16.vlgmr.msra.gmra.mxu0 %vm262_vm11, %v422_v44 }
 0x2dc   :  { %811 = vmatprep.mubr.msk.bf16.mxu0 %vm957_vm1, %v956_v7  ;;  %804 = vmatpush3.bf16.msra.mxu0 %v854_v56 }
 0x2dd   :  { %805 = vmatprep.subr.bf16.mxu0 %v956_v7 }
 0x2e0   :  { %806 = vmatpush3.bf16.msra.mxu0 %v855_v57 }
 0x2e1   :  { %807 = vmatprep.subr.bf16.mxu0 %v956_v7 }
 0x2e4   :  { %808 = vmatpush3.bf16.msra.mxu0 %v856_v58 }
 0x2e5   :  { %809 = vmatprep.subr.bf16.mxu0 %v956_v7 }
 0x2e8   :  { %810 = vmatpush3.bf16.msra.mxu0 %v857_v59 }
 0x35f   :  { %v493_v46 = vpop.xlane.xlu1 %492 }
 0x360   :  { %v498_v47 = vmul.f32 0.015625, %v493_v46 }
 0x362   :  { %v500_v48 = vsub.f32 %v420_v38, %v498_v47 }
 0x363   :  { %v496_v49 = vpop.xlane.xlu0 %495 }
 0x364   :  { %v499_v50 = vmul.f32 0.015625, %v496_v49  ;;  %v502_v51 = vmul.f32 %v500_v48, %v500_v48 }
 0x366   :  { %v501_v52 = vsub.f32 %v421_v43, %v499_v50  ;;  %v504_v53 = vsel %vm262_vm11, %v502_v51, 0.0 }
 0x367   :  { %505 = vadd.xlane.f32.xlu1 %v504_v53 }
 0x368   :  { %v503_v54 = vmul.f32 %v501_v52, %v501_v52 }
 0x36a   :  { %v507_v55 = vsel %vm262_vm11, %v503_v54, 0.0 }
 0x36b   :  { %508 = vadd.xlane.f32.xlu1 %v507_v55 }
 0x39b   :  { %v484_v60 = vpop.f32.mrf.mxu0 }
 0x39d   :  { %v801_v61 = vpop.f32.mrf.mxu0 }
 0x39f   :  { %v487_v62 = vpop.f32.mrf.mxu0 }
 0x3a1   :  { %v802_v63 = vpop.f32.mrf.mxu0 }
 0x3f0   :  { %v506_v2 = vpop.xlane.xlu1 %505 }
 0x3f1   :  { %v510_v3 = vmul.f32 0.015625, %v506_v2 }
 0x3f3   :  { %v512_v4 = vadd.f32 1e-06, %v510_v3 }
 0x3f4   :  { %v509_v5 = vpop.xlane.xlu1 %508 }
 0x3f5   :  { %872 = vrsqrt.f32 %v512_v4  ;;  %v511_v6 = vmul.f32 0.015625, %v509_v5 }
 0x3f7   :  { %v513_v8 = vadd.f32 1e-06, %v511_v6 }
 0x3f9   :  { %874 = vrsqrt.f32 %v513_v8 }
 0x402   :  { %v873_v9 = vpop.eup %872 }
 0x403   :  { %v516_v10 = vmul.f32 %v873_v9, %v500_v48 }
 0x405   :  { %v522_v14 = vmul.f32 %v731_v11, %v516_v10 }
 0x406   :  { %v875_v12 = vpop.eup %874 }
 0x407   :  { %v517_v13 = vmul.f32 %v875_v12, %v501_v52  ;;  %v528_v17 = vadd.f32 %v732_v15, %v522_v14 }
 0x409   :  { %v523_v16 = vmul.f32 %v731_v11, %v517_v13 }
 0x40b   :  { %v529_v18 = vadd.f32 %v732_v15, %v523_v16 }
 0x40d   :  { %v530_v19 = vpack.c.bf16 %v529_v18, %v528_v17 }
 0x40f   :  { %812 = vmatmul.mubr.msk.bf16.vlgmr.msra.gmra.mxu0 %vm262_vm11, %v530_v19 }
 0x4cf   :  { %v596_v23 = vpop.f32.mrf.mxu0 }
 0x4d0   :  { %v597_v24 = vadd.f32 %v733_v22, %v596_v23 }
 0x4d1   :  { %v813_v25 = vpop.f32.mrf.mxu0 }
 0x4d2   :  { %v739_v26 = vmul.f32 -1.442695, %v597_v24 }
 0x4d3   :  { %v599_v27 = vpop.f32.mrf.mxu0 }
 0x4d4   :  { %876 = vpow2.f32 %v739_v26  ;;  %v600_v28 = vadd.f32 %v733_v22, %v599_v27 }
 0x4d5   :  { %v814_v29 = vpop.f32.mrf.mxu0 }
 0x4d6   :  { %v740_v30 = vmul.f32 -1.442695, %v600_v28 }
 0x4d8   :  { %878 = vpow2.f32 %v740_v30 }
 0x4e1   :  { %v877_v31 = vpop.eup %876 }
 0x4e2   :  { %v609_v32 = vadd.f32 1.0, %v877_v31 }
 0x4e4   :  { %880 = vrcp.f32 %v609_v32 }
 0x4e5   :  { %v879_v33 = vpop.eup %878 }
 0x4e6   :  { %v610_v7 = vadd.f32 1.0, %v879_v33 }
 0x4e8   :  { %882 = vrcp.f32 %v610_v7 }
 0x4f1   :  { %v881_v34 = vpop.eup %880 }
 0x4f2   :  { %v615_v36 = vmul.f32 %v881_v34, %v597_v24 }
 0x4f5   :  { %v883_v35 = vpop.eup %882 }
 0x4f6   :  { %v616_v37 = vmul.f32 %v883_v35, %v600_v28 }
 0x4f8   :  { %v617_v38 = vpack.c.bf16 %v616_v37, %v615_v36 }
 0x4fa   :  { %820 = vmatmul.mubr.msk.bf16.vlgmr.msra.gmra.mxu1 %vm111_vm0, %v617_v38 }
 0x5ba   :  { %v667_v40 = vpop.f32.mrf.mxu1 }
 0x5bb   :  { %v668_v41 = vadd.f32 %v667_v40, %v484_v60 }
 0x5bc   :  { %v821_v42 = vpop.f32.mrf.mxu1 }
 0x5bd   :  { %v678_v43 = vadd.f32 %v744_v39, %v668_v41 }
 0x5be   :  { %v670_v44 = vpop.f32.mrf.mxu1 }
 0x5bf   :  { %v680_v45 = vadd.f32 %v678_v43, %v990_v0  ;;  %v671_v46 = vadd.f32 %v670_v44, %v487_v62 }
 0x5c0   :  { %v822_v47 = vpop.f32.mrf.mxu1 }
 0x5c1   :  { %682 = vst.msk [vmem:[#allocation7] sm:$0xff] %vm111_vm0, %v680_v45  ;;  %v679_v48 = vadd.f32 %v744_v39, %v671_v46 }
 0x5c3   :  { %v681_v49 = vadd.f32 %v679_v48, %v992_v1 }
 0x5c5   :  { %683 = vst.msk [vmem:[#allocation7 + $0x8] sm:$0xff] %vm111_vm0, %v681_v49 }
 0x5c6   :  { %935 = shalt.err (!%p932_p0)
}
 0x5c7   :  { %695 = dma.vmem_to_hbm [thread:$0]  %s690_s12, 256, %s1088_s3, [#allocation4], %s951_s15, %s951_s15, %s952_s16  }
 0x5c8   :  { %948 = dma.done.wait [#allocation4], 256  }
 0x5c9   :  { %949 = vsyncadd [#allocation4], 4294967040 }
 0x5ca   :  { %699 = vsyncpa [#allocation3], 1 }
 0x5cb   :  { %700 = vsyncpa [#allocation6], 1 }
 0x5cc   :  { %701 = vsyncpa [#allocation4], 1 }

</bundles_post_ra>
